<compile_context>
chip_gen: v5e
topology: v5e:2x2
jax: 0.10.0
libtpu: 0.0.40
codegen_flags: <defaults>
</compile_context>

<pallas_src>
import math
import functools

import jax
import jax.numpy as jnp
import numpy as np
from jax.experimental import pallas as pl
from jax.experimental.pallas import tpu as pltpu


def _mbert_kernel(mask_ref, x_ref, wqkv_ref, bqkv_ref, out_ref, *,
                  batch, seq, hidden, num_heads, head_dim):
    """Single invocation: fused QKV projection + multi-head attention + tanh."""
    x = x_ref[...]                                            # (B*S, H)

    # Fused Q/K/V projection: one MXU matmul + one bias add.
    qkv = jnp.dot(x, wqkv_ref[...],
                  preferred_element_type=jnp.float32) + bqkv_ref[0]   # (B*S, 3H)

    # Additive attention mask over the key axis, broadcast ONCE (hoisted).
    mask = mask_ref[...].reshape(batch, 1, seq)               # (B, 1, S)
    mask_full = jnp.broadcast_to(mask, (batch, seq, seq))     # (B, S, S)

    scale = 1.0 / math.sqrt(head_dim)

    ctx_heads = []
    for h in range(num_heads):                                # small, unrolled
        lo = h * head_dim
        hi = lo + head_dim
        qh = qkv[:, lo:hi].reshape(batch, seq, head_dim)                    # (B,S,hd)
        kh = qkv[:, hidden + lo:hidden + hi].reshape(batch, seq, head_dim)  # (B,S,hd)
        vh = qkv[:, 2 * hidden + lo:2 * hidden + hi].reshape(batch, seq, head_dim)

        # Scores: contract on the last dim of both operands (no explicit K^T).
        s = jnp.einsum('bqd,bkd->bqk', qh, kh,
                       preferred_element_type=jnp.float32) * scale
        s = s + mask_full                                     # (B, S, S)

        # Numerically-stable softmax over the key axis (exact normalization;
        # the approximate EUP reciprocal was not accurate enough for rtol=1e-3).
        m = jnp.max(s, axis=-1, keepdims=True)
        p = jnp.exp(s - m)
        p = p / jnp.sum(p, axis=-1, keepdims=True)

        # Context for this head: (B, S, hd)
        ctx_heads.append(jnp.einsum('bqk,bkd->bqd', p, vh,
                                    preferred_element_type=jnp.float32))

    # Re-merge heads along the lane axis and store once (lane-dense).
    ctx = jnp.concatenate(ctx_heads, axis=-1)                 # (B, S, H)
    out_ref[...] = jnp.tanh(ctx).astype(out_ref.dtype)


def mbert_impr_mech(inputs, params, *, num_heads):
    """inputs: (B, S, H) f32; params: dict with wq/bq/wk/bk/wv/bv."""
    B, S, H = inputs.shape
    assert H % num_heads == 0
    head_dim = H // num_heads

    # zero_tensor from the module's forward (additive mask of zeros).
    mask = jnp.zeros((B, 1, 1, S), dtype=jnp.float32)

    # Pack Q/K/V weights & biases for a single fused projection matmul.
    wqkv = jnp.concatenate([params["wq"], params["wk"], params["wv"]], axis=1)  # (H, 3H)
    bqkv = jnp.concatenate([params["bq"], params["bk"], params["bv"]], axis=1)  # (1, 3H)

    x2d = inputs.reshape(B * S, H)   # free layout plumbing in the wrapper

    kernel = functools.partial(_mbert_kernel, batch=B, seq=S, hidden=H,
                               num_heads=num_heads, head_dim=head_dim)

    grid_spec = pltpu.PrefetchScalarGridSpec(
        num_scalar_prefetch=0,
        grid=(1,),                                           # single fused step
        in_specs=[
            pl.BlockSpec((B, 1, 1, S), lambda i: (0, 0, 0, 0)),   # mask
            pl.BlockSpec((B * S, H), lambda i: (0, 0)),           # x
            pl.BlockSpec((H, 3 * H), lambda i: (0, 0)),           # wqkv
            pl.BlockSpec((1, 3 * H), lambda i: (0, 0)),           # bqkv
        ],
        out_specs=pl.BlockSpec((B, S, H), lambda i: (0, 0, 0)),
    )

    return pl.pallas_call(
        kernel,
        out_shape=jax.ShapeDtypeStruct((B, S, H), jnp.float32),
        grid_spec=grid_spec,
        compiler_params=pltpu.CompilerParams(
            dimension_semantics=("arbitrary",)),
    )(mask, x2d, wqkv, bqkv)


def _reference(inputs, params, *, num_heads):
    """Pure-JAX reference mirroring BertSelfAttention(zero mask) + tanh."""
    B, S, H = inputs.shape
    hd = H // num_heads
    mask = jnp.zeros((B, 1, 1, S), dtype=jnp.float32)

    def proj(w, b):
        return inputs @ w + b[0]                          # (B, S, H)

    def split_heads(t):
        return t.reshape(B, S, num_heads, hd).transpose(0, 2, 1, 3)

    q = split_heads(proj(params["wq"], params["bq"]))
    k = split_heads(proj(params["wk"], params["bk"]))
    v = split_heads(proj(params["wv"], params["bv"]))

    scores = jnp.einsum("bhqd,bhkd->bhqk", q, k) / math.sqrt(hd)
    scores = scores + mask                                # (B,1,1,S) broadcast
    probs = jax.nn.softmax(scores, axis=-1)
    ctx = jnp.einsum("bhqk,bhkd->bhqd", probs, v)
    ctx = ctx.transpose(0, 2, 1, 3).reshape(B, S, H)
    return jnp.tanh(ctx)


if __name__ == "__main__":
    # Small config consistent with the module: hidden=32, 4 heads, seq=8, batch=2.
    B, S, H = 2, 8, 32
    NUM_HEADS = 4

    key = jax.random.PRNGKey(0)
    k_x, k_wq, k_bq, k_wk, k_bk, k_wv, k_bv = jax.random.split(key, 7)

    inputs = jax.random.normal(k_x, (B, S, H), dtype=jnp.float32)

    # Deterministic synthetic parameters (nn.Linear(H, H) x3), stored as
    # (in, out) so the kernel computes y = x @ W + b.
    params = {
        "wq": 0.02 * jax.random.normal(k_wq, (H, H), dtype=jnp.float32),
        "bq": 0.02 * jax.random.normal(k_bq, (1, H), dtype=jnp.float32),
        "wk": 0.02 * jax.random.normal(k_wk, (H, H), dtype=jnp.float32),
        "bk": 0.02 * jax.random.normal(k_bk, (1, H), dtype=jnp.float32),
        "wv": 0.02 * jax.random.normal(k_wv, (H, H), dtype=jnp.float32),
        "bv": 0.02 * jax.random.normal(k_bv, (1, H), dtype=jnp.float32),
    }

    out = mbert_impr_mech(inputs, params, num_heads=NUM_HEADS)
    out = jax.block_until_ready(out)

    ref = jax.block_until_ready(_reference(inputs, params, num_heads=NUM_HEADS))
    np.testing.assert_allclose(np.asarray(out), np.asarray(ref),
                               rtol=1e-3, atol=1e-4)

    print("KERNEL_OK")
</pallas_src>

<mosaic_0001>
module attributes {stable_mosaic.version = 11 : i64} {
  func.func @_mbert_kernel(%arg0: i32, %arg1: memref<2x1x1x8xf32, #tpu.memory_space<vmem>>, %arg2: memref<16x32xf32, #tpu.memory_space<vmem>>, %arg3: memref<32x96xf32, #tpu.memory_space<vmem>>, %arg4: memref<1x96xf32, #tpu.memory_space<vmem>>, %arg5: memref<2x8x32xf32, #tpu.memory_space<vmem>>) attributes {dimension_semantics = [#tpu.dimension_semantics<arbitrary>], iteration_bounds = array<i64: 1>, scalar_prefetch = 0 : i64, scratch_operands = 0 : i64, tpu.core_type = #tpu.core_type<tc>, window_params = [{pipeline_mode = #tpu.pipeline_mode<synchronous>, transform_indices = @transform_0, window_bounds = array<i64: 2, 1, 1, 8>}, {pipeline_mode = #tpu.pipeline_mode<synchronous>, transform_indices = @transform_1, window_bounds = array<i64: 16, 32>}, {pipeline_mode = #tpu.pipeline_mode<synchronous>, transform_indices = @transform_2, window_bounds = array<i64: 32, 96>}, {pipeline_mode = #tpu.pipeline_mode<synchronous>, transform_indices = @transform_3, window_bounds = array<i64: 1, 96>}, {pipeline_mode = #tpu.pipeline_mode<synchronous>, transform_indices = @transform_4, window_bounds = array<i64: 2, 8, 32>}]} {
    %c0 = arith.constant 0 : index
    %c0_0 = arith.constant 0 : index
    %0 = vector.load %arg2[%c0, %c0_0] : memref<16x32xf32, #tpu.memory_space<vmem>>, vector<16x32xf32>
    %c0_1 = arith.constant 0 : index
    %c0_2 = arith.constant 0 : index
    %1 = vector.load %arg3[%c0_1, %c0_2] : memref<32x96xf32, #tpu.memory_space<vmem>>, vector<32x96xf32>
    %cst = arith.constant dense<0.000000e+00> : vector<16x96xf32>
    %2 = tpu.matmul %0, %1, %cst {dimension_numbers = #tpu.dot_dimension_numbers<[1], [0], [0], [1], [0, 0, 1, 1], [], []>} : vector<16x32xf32>, vector<32x96xf32>, vector<16x96xf32> -> vector<16x96xf32>
    %c0_3 = arith.constant 0 : index
    %c0_4 = arith.constant 0 : index
    %3 = vector.load %arg4[%c0_3, %c0_4] : memref<1x96xf32, #tpu.memory_space<vmem>>, vector<1x96xf32>
    %4 = vector.shape_cast %3 : vector<1x96xf32> to vector<96xf32>
    %5 = vector.shape_cast %4 : vector<96xf32> to vector<1x96xf32>
    %6 = vector.broadcast %5 : vector<1x96xf32> to vector<16x96xf32>
    %7 = arith.addf %2, %6 : vector<16x96xf32>
    %c0_5 = arith.constant 0 : index
    %c0_6 = arith.constant 0 : index
    %c0_7 = arith.constant 0 : index
    %c0_8 = arith.constant 0 : index
    %8 = vector.load %arg1[%c0_5, %c0_6, %c0_7, %c0_8] : memref<2x1x1x8xf32, #tpu.memory_space<vmem>>, vector<2x1x1x8xf32>
    %9 = vector.shape_cast %8 : vector<2x1x1x8xf32> to vector<2x1x8xf32>
    %10 = vector.shape_cast %9 : vector<2x1x8xf32> to vector<2x1x8xf32>
    %11 = vector.broadcast %10 : vector<2x1x8xf32> to vector<2x8x8xf32>
    %12 = vector.extract_strided_slice %7 {offsets = [0, 0], sizes = [16, 8], strides = [1, 1]} : vector<16x96xf32> to vector<16x8xf32>
    %13 = vector.shape_cast %12 : vector<16x8xf32> to vector<2x8x8xf32>
    %14 = vector.extract_strided_slice %7 {offsets = [0, 32], sizes = [16, 8], strides = [1, 1]} : vector<16x96xf32> to vector<16x8xf32>
    %15 = vector.shape_cast %14 : vector<16x8xf32> to vector<2x8x8xf32>
    %16 = vector.extract_strided_slice %7 {offsets = [0, 64], sizes = [16, 8], strides = [1, 1]} : vector<16x96xf32> to vector<16x8xf32>
    %17 = vector.shape_cast %16 : vector<16x8xf32> to vector<2x8x8xf32>
    "tpu.trace_start"() <{level = 10 : i32, message = "bqd,bkd->bqk"}> : () -> ()
    %cst_9 = arith.constant dense<0.000000e+00> : vector<2x8x8xf32>
    %18 = tpu.matmul %13, %15, %cst_9 {dimension_numbers = #tpu.dot_dimension_numbers<[2], [2], [1], [1], [0, 0, 0, 1, 1, 1], [0], [0]>} : vector<2x8x8xf32>, vector<2x8x8xf32>, vector<2x8x8xf32> -> vector<2x8x8xf32>
    "tpu.trace_stop"() : () -> ()
    %cst_10 = arith.constant 0.353553385 : f32
    %19 = vector.broadcast %cst_10 : f32 to vector<2x8x8xf32>
    %20 = arith.mulf %18, %19 : vector<2x8x8xf32>
    %21 = arith.addf %20, %11 : vector<2x8x8xf32>
    %cst_11 = arith.constant dense<0xFF800000> : vector<2x8xf32>
    %22 = vector.multi_reduction <maximumf>, %21, %cst_11 [2] : vector<2x8x8xf32> to vector<2x8xf32>
    %23 = vector.shape_cast %22 : vector<2x8xf32> to vector<2x8x1xf32>
    %24 = vector.broadcast %23 : vector<2x8x1xf32> to vector<2x8x8xf32>
    %25 = arith.subf %21, %24 : vector<2x8x8xf32>
    %26 = math.exp %25 : vector<2x8x8xf32>
    %cst_12 = arith.constant dense<0.000000e+00> : vector<2x8xf32>
    %27 = vector.multi_reduction <add>, %26, %cst_12 [2] : vector<2x8x8xf32> to vector<2x8xf32>
    %28 = vector.shape_cast %27 : vector<2x8xf32> to vector<2x8x1xf32>
    %29 = vector.broadcast %28 : vector<2x8x1xf32> to vector<2x8x8xf32>
    %30 = arith.divf %26, %29 : vector<2x8x8xf32>
    "tpu.trace_start"() <{level = 10 : i32, message = "bqk,bkd->bqd"}> : () -> ()
    %cst_13 = arith.constant dense<0.000000e+00> : vector<2x8x8xf32>
    %31 = tpu.matmul %30, %17, %cst_13 {dimension_numbers = #tpu.dot_dimension_numbers<[2], [1], [1], [2], [0, 0, 0, 1, 1, 2], [0], [0]>} : vector<2x8x8xf32>, vector<2x8x8xf32>, vector<2x8x8xf32> -> vector<2x8x8xf32>
    "tpu.trace_stop"() : () -> ()
    %32 = vector.extract_strided_slice %7 {offsets = [0, 8], sizes = [16, 8], strides = [1, 1]} : vector<16x96xf32> to vector<16x8xf32>
    %33 = vector.shape_cast %32 : vector<16x8xf32> to vector<2x8x8xf32>
    %34 = vector.extract_strided_slice %7 {offsets = [0, 40], sizes = [16, 8], strides = [1, 1]} : vector<16x96xf32> to vector<16x8xf32>
    %35 = vector.shape_cast %34 : vector<16x8xf32> to vector<2x8x8xf32>
    %36 = vector.extract_strided_slice %7 {offsets = [0, 72], sizes = [16, 8], strides = [1, 1]} : vector<16x96xf32> to vector<16x8xf32>
    %37 = vector.shape_cast %36 : vector<16x8xf32> to vector<2x8x8xf32>
    "tpu.trace_start"() <{level = 10 : i32, message = "bqd,bkd->bqk"}> : () -> ()
    %cst_14 = arith.constant dense<0.000000e+00> : vector<2x8x8xf32>
    %38 = tpu.matmul %33, %35, %cst_14 {dimension_numbers = #tpu.dot_dimension_numbers<[2], [2], [1], [1], [0, 0, 0, 1, 1, 1], [0], [0]>} : vector<2x8x8xf32>, vector<2x8x8xf32>, vector<2x8x8xf32> -> vector<2x8x8xf32>
    "tpu.trace_stop"() : () -> ()
    %cst_15 = arith.constant 0.353553385 : f32
    %39 = vector.broadcast %cst_15 : f32 to vector<2x8x8xf32>
    %40 = arith.mulf %38, %39 : vector<2x8x8xf32>
    %41 = arith.addf %40, %11 : vector<2x8x8xf32>
    %cst_16 = arith.constant dense<0xFF800000> : vector<2x8xf32>
    %42 = vector.multi_reduction <maximumf>, %41, %cst_16 [2] : vector<2x8x8xf32> to vector<2x8xf32>
    %43 = vector.shape_cast %42 : vector<2x8xf32> to vector<2x8x1xf32>
    %44 = vector.broadcast %43 : vector<2x8x1xf32> to vector<2x8x8xf32>
    %45 = arith.subf %41, %44 : vector<2x8x8xf32>
    %46 = math.exp %45 : vector<2x8x8xf32>
    %cst_17 = arith.constant dense<0.000000e+00> : vector<2x8xf32>
    %47 = vector.multi_reduction <add>, %46, %cst_17 [2] : vector<2x8x8xf32> to vector<2x8xf32>
    %48 = vector.shape_cast %47 : vector<2x8xf32> to vector<2x8x1xf32>
    %49 = vector.broadcast %48 : vector<2x8x1xf32> to vector<2x8x8xf32>
    %50 = arith.divf %46, %49 : vector<2x8x8xf32>
    "tpu.trace_start"() <{level = 10 : i32, message = "bqk,bkd->bqd"}> : () -> ()
    %cst_18 = arith.constant dense<0.000000e+00> : vector<2x8x8xf32>
    %51 = tpu.matmul %50, %37, %cst_18 {dimension_numbers = #tpu.dot_dimension_numbers<[2], [1], [1], [2], [0, 0, 0, 1, 1, 2], [0], [0]>} : vector<2x8x8xf32>, vector<2x8x8xf32>, vector<2x8x8xf32> -> vector<2x8x8xf32>
    "tpu.trace_stop"() : () -> ()
    %52 = vector.extract_strided_slice %7 {offsets = [0, 16], sizes = [16, 8], strides = [1, 1]} : vector<16x96xf32> to vector<16x8xf32>
    %53 = vector.shape_cast %52 : vector<16x8xf32> to vector<2x8x8xf32>
    %54 = vector.extract_strided_slice %7 {offsets = [0, 48], sizes = [16, 8], strides = [1, 1]} : vector<16x96xf32> to vector<16x8xf32>
    %55 = vector.shape_cast %54 : vector<16x8xf32> to vector<2x8x8xf32>
    %56 = vector.extract_strided_slice %7 {offsets = [0, 80], sizes = [16, 8], strides = [1, 1]} : vector<16x96xf32> to vector<16x8xf32>
    %57 = vector.shape_cast %56 : vector<16x8xf32> to vector<2x8x8xf32>
    "tpu.trace_start"() <{level = 10 : i32, message = "bqd,bkd->bqk"}> : () -> ()
    %cst_19 = arith.constant dense<0.000000e+00> : vector<2x8x8xf32>
    %58 = tpu.matmul %53, %55, %cst_19 {dimension_numbers = #tpu.dot_dimension_numbers<[2], [2], [1], [1], [0, 0, 0, 1, 1, 1], [0], [0]>} : vector<2x8x8xf32>, vector<2x8x8xf32>, vector<2x8x8xf32> -> vector<2x8x8xf32>
    "tpu.trace_stop"() : () -> ()
    %cst_20 = arith.constant 0.353553385 : f32
    %59 = vector.broadcast %cst_20 : f32 to vector<2x8x8xf32>
    %60 = arith.mulf %58, %59 : vector<2x8x8xf32>
    %61 = arith.addf %60, %11 : vector<2x8x8xf32>
    %cst_21 = arith.constant dense<0xFF800000> : vector<2x8xf32>
    %62 = vector.multi_reduction <maximumf>, %61, %cst_21 [2] : vector<2x8x8xf32> to vector<2x8xf32>
    %63 = vector.shape_cast %62 : vector<2x8xf32> to vector<2x8x1xf32>
    %64 = vector.broadcast %63 : vector<2x8x1xf32> to vector<2x8x8xf32>
    %65 = arith.subf %61, %64 : vector<2x8x8xf32>
    %66 = math.exp %65 : vector<2x8x8xf32>
    %cst_22 = arith.constant dense<0.000000e+00> : vector<2x8xf32>
    %67 = vector.multi_reduction <add>, %66, %cst_22 [2] : vector<2x8x8xf32> to vector<2x8xf32>
    %68 = vector.shape_cast %67 : vector<2x8xf32> to vector<2x8x1xf32>
    %69 = vector.broadcast %68 : vector<2x8x1xf32> to vector<2x8x8xf32>
    %70 = arith.divf %66, %69 : vector<2x8x8xf32>
    "tpu.trace_start"() <{level = 10 : i32, message = "bqk,bkd->bqd"}> : () -> ()
    %cst_23 = arith.constant dense<0.000000e+00> : vector<2x8x8xf32>
    %71 = tpu.matmul %70, %57, %cst_23 {dimension_numbers = #tpu.dot_dimension_numbers<[2], [1], [1], [2], [0, 0, 0, 1, 1, 2], [0], [0]>} : vector<2x8x8xf32>, vector<2x8x8xf32>, vector<2x8x8xf32> -> vector<2x8x8xf32>
    "tpu.trace_stop"() : () -> ()
    %72 = vector.extract_strided_slice %7 {offsets = [0, 24], sizes = [16, 8], strides = [1, 1]} : vector<16x96xf32> to vector<16x8xf32>
    %73 = vector.shape_cast %72 : vector<16x8xf32> to vector<2x8x8xf32>
    %74 = vector.extract_strided_slice %7 {offsets = [0, 56], sizes = [16, 8], strides = [1, 1]} : vector<16x96xf32> to vector<16x8xf32>
    %75 = vector.shape_cast %74 : vector<16x8xf32> to vector<2x8x8xf32>
    %76 = vector.extract_strided_slice %7 {offsets = [0, 88], sizes = [16, 8], strides = [1, 1]} : vector<16x96xf32> to vector<16x8xf32>
    %77 = vector.shape_cast %76 : vector<16x8xf32> to vector<2x8x8xf32>
    "tpu.trace_start"() <{level = 10 : i32, message = "bqd,bkd->bqk"}> : () -> ()
    %cst_24 = arith.constant dense<0.000000e+00> : vector<2x8x8xf32>
    %78 = tpu.matmul %73, %75, %cst_24 {dimension_numbers = #tpu.dot_dimension_numbers<[2], [2], [1], [1], [0, 0, 0, 1, 1, 1], [0], [0]>} : vector<2x8x8xf32>, vector<2x8x8xf32>, vector<2x8x8xf32> -> vector<2x8x8xf32>
    "tpu.trace_stop"() : () -> ()
    %cst_25 = arith.constant 0.353553385 : f32
    %79 = vector.broadcast %cst_25 : f32 to vector<2x8x8xf32>
    %80 = arith.mulf %78, %79 : vector<2x8x8xf32>
    %81 = arith.addf %80, %11 : vector<2x8x8xf32>
    %cst_26 = arith.constant dense<0xFF800000> : vector<2x8xf32>
    %82 = vector.multi_reduction <maximumf>, %81, %cst_26 [2] : vector<2x8x8xf32> to vector<2x8xf32>
    %83 = vector.shape_cast %82 : vector<2x8xf32> to vector<2x8x1xf32>
    %84 = vector.broadcast %83 : vector<2x8x1xf32> to vector<2x8x8xf32>
    %85 = arith.subf %81, %84 : vector<2x8x8xf32>
    %86 = math.exp %85 : vector<2x8x8xf32>
    %cst_27 = arith.constant dense<0.000000e+00> : vector<2x8xf32>
    %87 = vector.multi_reduction <add>, %86, %cst_27 [2] : vector<2x8x8xf32> to vector<2x8xf32>
    %88 = vector.shape_cast %87 : vector<2x8xf32> to vector<2x8x1xf32>
    %89 = vector.broadcast %88 : vector<2x8x1xf32> to vector<2x8x8xf32>
    %90 = arith.divf %86, %89 : vector<2x8x8xf32>
    "tpu.trace_start"() <{level = 10 : i32, message = "bqk,bkd->bqd"}> : () -> ()
    %cst_28 = arith.constant dense<0.000000e+00> : vector<2x8x8xf32>
    %91 = tpu.matmul %90, %77, %cst_28 {dimension_numbers = #tpu.dot_dimension_numbers<[2], [1], [1], [2], [0, 0, 0, 1, 1, 2], [0], [0]>} : vector<2x8x8xf32>, vector<2x8x8xf32>, vector<2x8x8xf32> -> vector<2x8x8xf32>
    "tpu.trace_stop"() : () -> ()
    %92 = tpu.concatenate %31, %51, %71, %91 in 2 : vector<2x8x8xf32>, vector<2x8x8xf32>, vector<2x8x8xf32>, vector<2x8x8xf32> -> vector<2x8x32xf32>
    %93 = math.tanh %92 : vector<2x8x32xf32>
    %c0_29 = arith.constant 0 : index
    %c0_30 = arith.constant 0 : index
    %c0_31 = arith.constant 0 : index
    %94 = vector.load %arg5[%c0_29, %c0_30, %c0_31] : memref<2x8x32xf32, #tpu.memory_space<vmem>>, vector<2x8x32xf32>
    tpu.vector_store %arg5[%c0_29, %c0_30, %c0_31], %93 {strides = array<i32>} : memref<2x8x32xf32, #tpu.memory_space<vmem>>, vector<2x8x32xf32>,
    return
  }
  func.func @transform_0(%arg0: i32) -> (i32, i32, i32, i32) {
    %c0_i32 = arith.constant 0 : i32
    %c0_i32_0 = arith.constant 0 : i32
    %c0_i32_1 = arith.constant 0 : i32
    %c0_i32_2 = arith.constant 0 : i32
    %c0_i32_3 = arith.constant 0 : i32
    return %c0_i32, %c0_i32_0, %c0_i32_1, %c0_i32_2 : i32, i32, i32, i32
  }
  func.func @transform_1(%arg0: i32) -> (i32, i32) {
    %c0_i32 = arith.constant 0 : i32
    %c0_i32_0 = arith.constant 0 : i32
    %c0_i32_1 = arith.constant 0 : i32
    return %c0_i32, %c0_i32_0 : i32, i32
  }
  func.func @transform_2(%arg0: i32) -> (i32, i32) {
    %c0_i32 = arith.constant 0 : i32
    %c0_i32_0 = arith.constant 0 : i32
    %c0_i32_1 = arith.constant 0 : i32
    return %c0_i32, %c0_i32_0 : i32, i32
  }
  func.func @transform_3(%arg0: i32) -> (i32, i32) {
    %c0_i32 = arith.constant 0 : i32
    %c0_i32_0 = arith.constant 0 : i32
    %c0_i32_1 = arith.constant 0 : i32
    return %c0_i32, %c0_i32_0 : i32, i32
  }
  func.func @transform_4(%arg0: i32) -> (i32, i32, i32) {
    %c0_i32 = arith.constant 0 : i32
    %c0_i32_0 = arith.constant 0 : i32
    %c0_i32_1 = arith.constant 0 : i32
    %c0_i32_2 = arith.constant 0 : i32
    return %c0_i32, %c0_i32_0, %c0_i32_1 : i32, i32, i32
  }
}

</mosaic_0001>

<bundles_post_ra>
// kernel: tpu_custom_call.1
= control target key start
LH: loop header
LB: loop body
LE: loop exit
PB: predicated region body
PF: predicated region fallthrough
CT: control target
= control target key end

     0   :  { %9 = vsyncpa [#allocation3], 0  ;;  %s1199_s0 = inlined_call_operand.hbm [shape: f32[2,1,1,8], index: 0, kind: input, shape index: {}]   ;;  %s1200_s1 = inlined_call_operand.hbm [shape: f32[16,32], index: 1, kind: input, shape index: {}]   ;;  %s1201_s2 = inlined_call_operand.hbm [shape: f32[32,96], index: 2, kind: input, shape index: {}]   ;;  %s1202_s3 = inlined_call_operand.vmem [shape: f32[1,96], index: 3, kind: input, shape index: {}]   ;;  %s1203_s4 = inlined_call_operand.hbm [shape: f32[2,8,32], index: 4, kind: output, shape index: {}]  }
   0x1   :  { %10 = vsyncpa [#allocation6], 0  ;;  %s29_s17 = sshll.u32 %s1200_s1, 4  ;;  %s30_s17 = int_to_ptr.hbm [resolvable:$true] %s29_s17 }
   0x2   :  { %11 = vsyncpa [#allocation4], 0  ;;  %s1005_s18 = smov [#allocation5]   ;;  %s16_s22 = sshll.u32 %s1199_s0, 4  ;;  %s17_s22 = int_to_ptr.hbm [resolvable:$true] %s16_s22 }
   0x3   :  { %s31_s19 = sshll.u32 %s1005_s18, 4  ;;  %s1006_s23 = smov 128   ;;  %s32_s19 = int_to_ptr.vmem [resolvable:$true] %s31_s19 }
   0x4   :  { %s1007_s24 = smov 8   ;;  %s1008_s25 = smov [#allocation2]  }
   0x5   :  { %37 = dma.hbm_to_vmem [thread:$0]  %s30_s17, 256, %s32_s19, [#allocation6], %s1006_s23, %s1006_s23, %s1007_s24  }
   0x6   :  { %s18_s26 = sshll.u32 %s1008_s25, 4  ;;  %s1009_s1 = smov 16   ;;  %s19_s26 = int_to_ptr.vmem [resolvable:$true] %s18_s26 }
   0x7   :  { %s1010_s27 = smov 1   ;;  %s42_s30 = sshll.u32 %s1201_s2, 4  ;;  %s43_s30 = int_to_ptr.hbm [resolvable:$true] %s42_s30 }
   0x8   :  { %24 = dma.hbm_to_vmem [thread:$0]  %s17_s22, 32, %s19_s26, [#allocation3], %s1009_s1, %s1009_s1, %s1010_s27  }
   0x9   :  { %s1011_s0 = smov [#allocation7]  }
   0xa   :  { %s44_s5 = sshll.u32 %s1011_s0, 4  ;;  %s45_s5 = int_to_ptr.vmem [resolvable:$true] %s44_s5 }
   0xb   :  { %50 = dma.hbm_to_vmem [thread:$0]  %s43_s30, 512, %s45_s5, [#allocation6], %s1006_s23, %s1006_s23, %s1007_s24  }
   0xc   :  { %999 = dma.done.wait [#allocation3], 32  }
   0xd   :  { %1000 = vsyncadd [#allocation3], 4294967264 }
   0xe   :  { %1001 = dma.done.wait [#allocation6], 768  }
   0xf   :  { %1002 = vsyncadd [#allocation6], 4294966528  ;;  %v70_v0 = vld [vmem:[#allocation7 + $0x18] sm:$0xff]  ;;  %v69_v1 = vld [vmem:[#allocation7 + $0x10] sm:$0xff]  ;;  %vm75_vm0 = vcmask 261120   ;;  %s1012_s7 = smov 88  }
  0x10   :  { %94 = vmatpush.msra.mxu0 %v70_v0  ;;  %v68_v2 = vld [vmem:[#allocation7 + $0x8] sm:$0xff]  ;;  %v67_v3 = vld [vmem:[#allocation7] sm:$0xff]  ;;  %v65_v4 = vld [vmem:[#allocation5] sm:$0xff]  ;;  %s1013_s8 = smov 96   ;;  %s1014_s9 = smov 80   ;;  %vm116_vm1 = vcmask 64512  }
  0x11   :  { %v66_v5 = vld [vmem:[#allocation5 + $0x8] sm:$0xff]  ;;  %v864_v6 = vld [vmem:[%s1202_s3] ss:$0 sm:$0xff]  ;;  %s1015_s3 = smov 120   ;;  %s1016_s10 = smov 72  }
  0x12   :  { %95 = vmatpush.msra.mxu0 %v69_v1  ;;  %s1017_s11 = smov 112   ;;  %s1018_s12 = smov 104   ;;  %v865_v25 = vld [vmem:[#allocation2] ss:$0 sm:$0xff]  ;;  %v866_v31 = vld [vmem:[#allocation2 + $0x1] ss:$0 sm:$0xff] }
  0x13   :  { %s1019_s13 = smov 56   ;;  %s1020_s14 = smov 64  }
  0x14   :  { %96 = vmatpush.msra.mxu0 %v68_v2  ;;  %s1021_s15 = smov 48   ;;  %s1022_s16 = smov 40  }
  0x15   :  { %s1023_s17 = smov 24   ;;  %s1024_s18 = smov [#allocation8]  }
  0x16   :  { %97 = vmatpush.msra.mxu0 %v67_v3  ;;  %s792_s19 = sshll.u32 %s1024_s18, 4  ;;  %s794_s22 = sshll.u32 %s1203_s4, 4  ;;  %s793_s19 = int_to_ptr.vmem [resolvable:$true] %s792_s19  ;;  %s795_s22 = int_to_ptr.hbm [resolvable:$true] %s794_s22 }
  0x17   :  { %808 = vmatmul.msk.f32.vlgmr.msra.gmra.mxu0 %vm75_vm0, %v65_v4 }
  0x1f   :  { %809 = vmatmul.msk.f32.gmra.mxu0 %vm75_vm0, %v66_v5 }
  0x94   :  { %v99_v7 = vpop.f32.mrf.mxu0 }
  0x95   :  { %v1072_v8 = vadd.f32 %v864_v6, %v99_v7 }
  0x97   :  { %274 = vrot.lane.b32.xlu2 %v1072_v8, %s1012_s7  ;;  %114 = vrot.lane.b32.xlu0 %v1072_v8, %s1013_s8 }
  0x9c   :  { %v102_v9 = vpop.f32.mrf.mxu0 }
  0x9d   :  { %v1076_v10 = vadd.f32 %v864_v6, %v102_v9 }
  0x9f   :  { %302 = vrot.lane.b32.xlu1 %v1076_v10, %s1012_s7  ;;  %434 = vrot.lane.b32.xlu2 %v1072_v8, %s1014_s9  ;;  %v859_v59 = vpack.i.bf16 %v1076_v10, %v1072_v8 }
  0xa0   :  { %142 = vrot.lane.b32.xlu0 %v1076_v10, %s1013_s8 }
  0xa7   :  { %300 = vrot.lane.b32.xlu1 %v1076_v10, %s1015_s3  ;;  %594 = vrot.lane.b32.xlu2 %v1072_v8, %s1016_s10 }
  0xa8   :  { %272 = vrot.lane.b32.xlu0 %v1072_v8, %s1015_s3 }
  0xaf   :  { %432 = vrot.lane.b32.xlu1 %v1072_v8, %s1017_s11  ;;  %460 = vrot.lane.b32.xlu2 %v1076_v10, %s1017_s11 }
  0xb0   :  { %592 = vrot.lane.b32.xlu0 %v1072_v8, %s1018_s12 }
  0xb7   :  { %462 = vrot.lane.b32.xlu1 %v1076_v10, %s1014_s9 }
  0xb8   :  { %622 = vrot.lane.b32.xlu0 %v1076_v10, %s1016_s10 }
  0xbf   :  { %620 = vrot.lane.b32.xlu1 %v1076_v10, %s1018_s12 }
  0xf1   :  { %v275_v12 = vpop.permute.xlu2 %274 }
  0xf9   :  { %v435_v15 = vpop.permute.xlu2 %434 }
 0x101   :  { %v595_v18 = vpop.permute.xlu2 %594 }
 0x109   :  { %v115_v11 = vpop.permute.xlu0 %114  ;;  %v461_v23 = vpop.permute.xlu2 %460 }
 0x10a   :  { %810 = vmatpush.xpose.msk.msra.mxu1 %vm116_vm1, %v115_v11 }
 0x10d   :  { %811 = vmatmul.msk.f32.vlgmr.msra.gmra.mxu1 %vm116_vm1, %v1072_v8 }
 0x10e   :  { %816 = vmatpush.xpose.msk.msrb.mxu1 %vm116_vm1, %v275_v12 }
 0x111   :  { %v303_v13 = vpop.permute.xlu1 %302 }
 0x112   :  { %v143_v14 = vpop.permute.xlu0 %142 }
 0x113   :  { %812 = vmatpush.xpose.msk.msra.mxu2 %vm116_vm1, %v143_v14 }
 0x116   :  { %813 = vmatmul.msk.f32.vlgmr.msra.gmra.mxu2 %vm116_vm1, %v1076_v10 }
 0x117   :  { %818 = vmatpush.xpose.msk.msrb.mxu2 %vm116_vm1, %v303_v13 }
 0x119   :  { %v301_v16 = vpop.permute.xlu1 %300 }
 0x11a   :  { %v273_v17 = vpop.permute.xlu0 %272 }
 0x11b   :  { %822 = vmatpush.xpose.msk.msra.mxu2 %vm116_vm1, %v435_v15  ;;  %817 = vmatmul.msk.f32.vlgmr.msrb.gmra.mxu1 %vm116_vm1, %v273_v17 }
 0x11e   :  { %819 = vmatmul.msk.f32.vlgmr.msrb.gmra.mxu2 %vm116_vm1, %v301_v16 }
 0x11f   :  { %828 = vmatpush.xpose.msk.msrb.mxu2 %vm116_vm1, %v595_v18 }
 0x121   :  { %v433_v19 = vpop.permute.xlu1 %432 }
 0x122   :  { %v593_v20 = vpop.permute.xlu0 %592 }
 0x126   :  { %823 = vmatmul.msk.f32.vlgmr.msra.gmra.mxu2 %vm116_vm1, %v433_v19 }
 0x129   :  { %v463_v21 = vpop.permute.xlu1 %462 }
 0x12a   :  { %v623_v22 = vpop.permute.xlu0 %622  ;;  %824 = vmatpush.xpose.msk.msrb.mxu0 %vm116_vm1, %v463_v21 }
 0x12d   :  { %825 = vmatmul.msk.f32.vlgmr.msrb.gmra.mxu0 %vm116_vm1, %v461_v23 }
 0x12e   :  { %830 = vmatpush.xpose.msk.msra.mxu0 %vm116_vm1, %v623_v22  ;;  %829 = vmatmul.msk.f32.vlgmr.msrb.gmra.mxu2 %vm116_vm1, %v593_v20 }
 0x131   :  { %v621_v24 = vpop.permute.xlu1 %620 }
 0x135   :  { %831 = vmatmul.msk.f32.vlgmr.msra.gmra.mxu0 %vm116_vm1, %v621_v24 }
 0x18a   :  { %v138_v26 = vpop.f32.mrf.mxu1 }
 0x18b   :  { %v168_v27 = vmul.f32 0.35355338, %v138_v26 }
 0x18d   :  { %v170_v28 = vadd.f32 %v865_v25, %v168_v27 }
 0x18f   :  { %v172_v29 = vsel %vm116_vm1, %v170_v28, -inf }
 0x190   :  { %173 = vmax.xlane.f32.xlu2 %v172_v29 }
 0x198   :  { %v297_v30 = vpop.f32.mrf.mxu1 }
 0x199   :  { %v328_v32 = vmul.f32 0.35355338, %v297_v30  ;;  %v165_v33 = vpop.f32.mrf.mxu2 }
 0x19a   :  { %v169_v34 = vmul.f32 0.35355338, %v165_v33 }
 0x19b   :  { %v330_v35 = vadd.f32 %v865_v25, %v328_v32 }
 0x19c   :  { %v171_v36 = vadd.f32 %v866_v31, %v169_v34 }
 0x19d   :  { %v332_v37 = vsel %vm116_vm1, %v330_v35, -inf }
 0x19e   :  { %333 = vmax.xlane.f32.xlu1 %v332_v37  ;;  %v175_v38 = vsel %vm116_vm1, %v171_v36, -inf }
 0x19f   :  { %176 = vmax.xlane.f32.xlu0 %v175_v38 }
 0x1a1   :  { %v325_v39 = vpop.f32.mrf.mxu2 }
 0x1a2   :  { %v329_v52 = vmul.f32 0.35355338, %v325_v39 }
 0x1a4   :  { %v1117_v54 = vadd.f32 %v866_v31, %v329_v52 }
 0x1a6   :  { %v335_v56 = vsel %vm116_vm1, %v1117_v54, -inf }
 0x1a9   :  { %v457_v40 = vpop.f32.mrf.mxu2 }
 0x1aa   :  { %v485_v41 = vpop.f32.mrf.mxu0  ;;  %v488_v55 = vmul.f32 0.35355338, %v457_v40 }
 0x1ab   :  { %v489_v42 = vmul.f32 0.35355338, %v485_v41 }
 0x1ac   :  { %v490_v57 = vadd.f32 %v865_v25, %v488_v55 }
 0x1ad   :  { %v491_v43 = vadd.f32 %v866_v31, %v489_v42 }
 0x1ae   :  { %v492_v58 = vsel %vm116_vm1, %v490_v57, -inf }
 0x1af   :  { %v495_v44 = vsel %vm116_vm1, %v491_v43, -inf }
 0x1b0   :  { %496 = vmax.xlane.f32.xlu0 %v495_v44 }
 0x1b1   :  { %v617_v45 = vpop.f32.mrf.mxu2 }
 0x1b2   :  { %v648_v46 = vmul.f32 0.35355338, %v617_v45  ;;  %v645_v47 = vpop.f32.mrf.mxu0 }
 0x1b3   :  { %v649_v48 = vmul.f32 0.35355338, %v645_v47 }
 0x1b4   :  { %v1112_v49 = vadd.f32 %v865_v25, %v648_v46 }
 0x1b5   :  { %v651_v50 = vadd.f32 %v866_v31, %v649_v48 }
 0x1b6   :  { %v652_v51 = vsel %vm116_vm1, %v1112_v49, -inf }
 0x1b7   :  { %653 = vmax.xlane.f32.xlu1 %v652_v51  ;;  %v655_v53 = vsel %vm116_vm1, %v651_v50, -inf }
 0x1b8   :  { %656 = vmax.xlane.f32.xlu2 %v655_v53 }
 0x1c0   :  { %336 = vmax.xlane.f32.xlu2 %v335_v56 }
 0x1c8   :  { %493 = vmax.xlane.f32.xlu2 %v492_v58 }
 0x1d0   :  { %860 = vrot.lane.b32.xlu1 %v859_v59, %s1019_s13 }
 0x203   :  { %v174_v60 = vpop.xlane.xlu2 %173 }
 0x204   :  { %v178_v61 = vsub.f32 %v170_v28, %v174_v60 }
 0x206   :  { %v180_v62 = vmul.f32 1.442695, %v178_v61 }
 0x208   :  { %867 = vpow2.f32 %v180_v62 }
 0x20e   :  { %v1124_v63 = vpop.eup %867 }
 0x20f   :  { %v184_v0 = vsel %vm116_vm1, %v1124_v63, 0.0 }
 0x210   :  { %185 = vadd.xlane.f32.xlu0 %v184_v0 }
 0x211   :  { %v334_v1 = vpop.xlane.xlu1 %333 }
 0x212   :  { %v338_v2 = vsub.f32 %v330_v35, %v334_v1  ;;  %v177_v4 = vpop.xlane.xlu0 %176 }
 0x213   :  { %v179_v11 = vsub.f32 %v171_v36, %v177_v4 }
 0x214   :  { %v340_v3 = vmul.f32 1.442695, %v338_v2 }
 0x215   :  { %v182_v13 = vmul.f32 1.442695, %v179_v11 }
 0x216   :  { %869 = vpow2.f32 %v340_v3 }
 0x21c   :  { %v1128_v5 = vpop.eup %869 }
 0x21d   :  { %v344_v6 = vsel %vm116_vm1, %v1128_v5, 0.0 }
 0x21e   :  { %345 = vadd.xlane.f32.xlu2 %v344_v6 }
 0x223   :  { %v497_v7 = vpop.xlane.xlu0 %496 }
 0x224   :  { %v499_v9 = vsub.f32 %v491_v43, %v497_v7  ;;  %855 = vrot.lane.b32.xlu0 %v859_v59, %s1020_s14 }
 0x226   :  { %v502_v12 = vmul.f32 1.442695, %v499_v9 }
 0x228   :  { %871 = vpow2.f32 %v502_v12 }
 0x229   :  { %873 = vpow2.f32 %v182_v13 }
 0x22a   :  { %v654_v19 = vpop.xlane.xlu1 %653 }
 0x22b   :  { %v657_v17 = vpop.xlane.xlu2 %656  ;;  %v658_v30 = vsub.f32 %v1112_v49, %v654_v19 }
 0x22c   :  { %v659_v20 = vsub.f32 %v651_v50, %v657_v17 }
 0x22d   :  { %v660_v31 = vmul.f32 1.442695, %v658_v30 }
 0x22e   :  { %v1132_v14 = vpop.eup %871  ;;  %v662_v21 = vmul.f32 1.442695, %v659_v20 }
 0x22f   :  { %v507_v15 = vsel %vm116_vm1, %v1132_v14, 0.0  ;;  %v1136_v16 = vpop.eup %873 }
 0x230   :  { %508 = vadd.xlane.f32.xlu1 %v507_v15  ;;  %v187_v18 = vsel %vm116_vm1, %v1136_v16, 0.0  ;;  %875 = vpow2.f32 %v662_v21 }
 0x233   :  { %v337_v22 = vpop.xlane.xlu2 %336 }
 0x234   :  { %v339_v36 = vsub.f32 %v1117_v54, %v337_v22 }
 0x236   :  { %540 = vrot.lane.b32.xlu2 %v1072_v8, %s1021_s15  ;;  %v1141_v25 = vpop.eup %875  ;;  %v342_v37 = vmul.f32 1.442695, %v339_v36 }
 0x237   :  { %v667_v28 = vsel %vm116_vm1, %v1141_v25, 0.0 }
 0x238   :  { %188 = vadd.xlane.f32.xlu1 %v187_v18 }
 0x23b   :  { %v494_v26 = vpop.xlane.xlu2 %493 }
 0x23c   :  { %v498_v27 = vsub.f32 %v490_v57, %v494_v26 }
 0x23e   :  { %v500_v29 = vmul.f32 1.442695, %v498_v27 }
 0x240   :  { %877 = vpow2.f32 %v500_v29 }
 0x241   :  { %879 = vpow2.f32 %v660_v31 }
 0x242   :  { %v861_v23 = vpop.permute.xlu1 %860  ;;  %881 = vpow2.f32 %v342_v37 }
 0x243   :  { %v863_v24 = vunpack.i.h.bf16 %v861_v23  ;;  %v862_v54 = vunpack.i.l.bf16 %v861_v23 }
 0x245   :  { %427 = vmatpush.msra.mxu1 %v863_v24 }
 0x246   :  { %v1147_v32 = vpop.eup %877 }
 0x247   :  { %v504_v33 = vsel %vm116_vm1, %v1147_v32, 0.0  ;;  %v1151_v34 = vpop.eup %879 }
 0x248   :  { %v664_v35 = vsel %vm116_vm1, %v1151_v34, 0.0  ;;  %v1156_v38 = vpop.eup %881 }
 0x249   :  { %v347_v39 = vsel %vm116_vm1, %v1156_v38, 0.0 }
 0x24e   :  { %668 = vadd.xlane.f32.xlu0 %v667_v28 }
 0x251   :  { %566 = vrot.lane.b32.xlu1 %v1076_v10, %s1021_s15 }
 0x25f   :  { %505 = vadd.xlane.f32.xlu2 %v504_v33 }
 0x267   :  { %665 = vadd.xlane.f32.xlu2 %v664_v35 }
 0x27b   :  { %348 = vadd.xlane.f32.xlu1 %v347_v39 }
 0x27f   :  { %700 = vrot.lane.b32.xlu2 %v1072_v8, %s1022_s16 }
 0x283   :  { %v186_v40 = vpop.xlane.xlu0 %185 }
 0x284   :  { %883 = vrcp.f32 %v186_v40  ;;  %v201_v45 = vand.u32 2147483648, %v186_v40  ;;  %v199_v46 = vand.u32 2147483647, %v186_v40  ;;  %vm195_vm3 = vweird.f32 %v186_v40 }
 0x286   :  { %v202_v48 = vor.u32 1.1754944e-38, %v201_v45  ;;  %vm200_vm5 = vcmp.eq.f32.partialorder %v199_v46, 8.507059e+37 }
 0x28a   :  { %v884_v41 = vpop.eup %883 }
 0x28b   :  { %v191_v42 = vmul.f32 %v884_v41, %v186_v40  ;;  %vm196_vm2 = vweird.f32 %v884_v41 }
 0x28c   :  { %vm197_vm4 = vmor %vm195_vm3, %vm196_vm2 }
 0x28d   :  { %v192_v43 = vsub.f32 1.0, %v191_v42 }
 0x28f   :  { %v193_v44 = vmul.f32 %v884_v41, %v192_v43 }
 0x291   :  { %v194_v47 = vadd.f32 %v884_v41, %v193_v44  ;;  %v346_v55 = vpop.xlane.xlu2 %345 }
 0x292   :  { %885 = vrcp.f32 %v346_v55  ;;  %v361_v9 = vand.u32 2147483648, %v346_v55  ;;  %vm355_vm11 = vweird.f32 %v346_v55  ;;  %v359_v12 = vand.u32 2147483647, %v346_v55 }
 0x293   :  { %v198_v49 = vsel %vm197_vm4, %v884_v41, %v194_v47 }
 0x294   :  { %726 = vrot.lane.b32.xlu1 %v1076_v10, %s1022_s16  ;;  %v203_v50 = vsel %vm200_vm5, %v202_v48, %v198_v49  ;;  %v362_v18 = vor.u32 1.1754944e-38, %v361_v9  ;;  %vm360_vm13 = vcmp.eq.f32.partialorder %v359_v12, 8.507059e+37 }
 0x295   :  { %v204_v53 = vmul.f32 %v1124_v63, %v203_v50 }
 0x296   :  { %v856_v51 = vpop.permute.xlu0 %855 }
 0x297   :  { %v857_v8 = vunpack.i.l.bf16 %v856_v51  ;;  %v858_v52 = vunpack.i.h.bf16 %v856_v51 }
 0x298   :  { %v886_v58 = vpop.eup %885 }
 0x299   :  { %241 = vmatpush.msra.mxu3 %v857_v8  ;;  %v351_v10 = vmul.f32 %v886_v58, %v346_v55  ;;  %vm356_vm9 = vweird.f32 %v886_v58  ;;  %v541_v17 = vpop.permute.xlu2 %540 }
 0x29a   :  { %814 = vmatmul.msk.f32.vlgmr.msra.gmra.mxu3 %vm116_vm1, %v204_v53  ;;  %vm357_vm12 = vmor %vm355_vm11, %vm356_vm9 }
 0x29b   :  { %267 = vmatpush.msrb.mxu3 %v858_v52  ;;  %v352_v60 = vsub.f32 1.0, %v351_v10 }
 0x29d   :  { %401 = vmatpush.msra.mxu3 %v862_v54  ;;  %v353_v63 = vmul.f32 %v886_v58, %v352_v60 }
 0x29f   :  { %v354_v6 = vadd.f32 %v886_v58, %v353_v63 }
 0x2a1   :  { %v358_v15 = vsel %vm357_vm12, %v886_v58, %v354_v6 }
 0x2a2   :  { %v363_v19 = vsel %vm360_vm13, %v362_v18, %v358_v15 }
 0x2a3   :  { %v1164_v56 = vpop.xlane.xlu1 %508  ;;  %v364_v21 = vmul.f32 %v1128_v5, %v363_v19 }
 0x2a4   :  { %vm530_vm13 = vweird.f32 %v1164_v56 }
 0x2ab   :  { %v189_v57 = vpop.xlane.xlu1 %188 }
 0x2ac   :  { %887 = vrcp.f32 %v189_v57  ;;  %v216_v0 = vand.u32 2147483648, %v189_v57  ;;  %v214_v2 = vand.u32 2147483647, %v189_v57  ;;  %vm210_vm7 = vweird.f32 %v189_v57 }
 0x2ae   :  { %v217_v4 = vor.u32 1.1754944e-38, %v216_v0  ;;  %vm215_vm10 = vcmp.eq.f32.partialorder %v214_v2, 8.507059e+37 }
 0x2b2   :  { %v888_v59 = vpop.eup %887 }
 0x2b3   :  { %v206_v61 = vmul.f32 %v888_v59, %v189_v57  ;;  %vm211_vm6 = vweird.f32 %v888_v59 }
 0x2b4   :  { %vm212_vm8 = vmor %vm210_vm7, %vm211_vm6 }
 0x2b5   :  { %v207_v62 = vsub.f32 1.0, %v206_v61 }
 0x2b7   :  { %v208_v1 = vmul.f32 %v888_v59, %v207_v62 }
 0x2b9   :  { %v209_v3 = vadd.f32 %v888_v59, %v208_v1  ;;  %v536_v1 = vand.u32 2147483648, %v1164_v56 }
 0x2bb   :  { %v213_v7 = vsel %vm212_vm8, %v888_v59, %v209_v3  ;;  %v534_v3 = vand.u32 2147483647, %v1164_v56  ;;  %v537_v9 = vor.u32 1.1754944e-38, %v536_v1 }
 0x2bc   :  { %v218_v11 = vsel %vm215_vm10, %v217_v4, %v213_v7 }
 0x2bd   :  { %v219_v13 = vmul.f32 %v1136_v16, %v218_v11 }
 0x2bf   :  { %815 = vmatmul.msk.f32.vlgmr.msrb.gmra.mxu3 %vm116_vm1, %v219_v13 }
 0x2c0   :  { %561 = vmatpush.msrb.mxu3 %v541_v17 }
 0x2c1   :  { %v669_v50 = vpop.xlane.xlu0 %668 }
 0x2c2   :  { %v696_v15 = vand.u32 2147483648, %v669_v50  ;;  %v694_v17 = vand.u32 2147483647, %v669_v50 }
 0x2c3   :  { %v567_v20 = vpop.permute.xlu1 %566 }
 0x2c4   :  { %587 = vmatpush.msrb.mxu1 %v567_v20 }
 0x2c7   :  { %820 = vmatmul.msk.f32.vlgmr.msra.gmra.mxu3 %vm116_vm1, %v364_v21 }
 0x2d2   :  { %v506_v22 = vpop.xlane.xlu2 %505 }
 0x2d3   :  { %889 = vrcp.f32 %v506_v22  ;;  %v521_v27 = vand.u32 2147483648, %v506_v22  ;;  %v519_v29 = vand.u32 2147483647, %v506_v22  ;;  %vm515_vm15 = vweird.f32 %v506_v22 }
 0x2d5   :  { %v522_v33 = vor.u32 1.1754944e-38, %v521_v27  ;;  %vm520_vm3 = vcmp.eq.f32.partialorder %v519_v29, 8.507059e+37 }
 0x2d9   :  { %v890_v23 = vpop.eup %889 }
 0x2da   :  { %v511_v24 = vmul.f32 %v890_v23, %v506_v22  ;;  %v666_v16 = vpop.xlane.xlu2 %665  ;;  %vm516_vm14 = vweird.f32 %v890_v23 }
 0x2db   :  { %891 = vrcp.f32 %v666_v16  ;;  %vm517_vm2 = vmor %vm515_vm15, %vm516_vm14  ;;  %v681_v41 = vand.u32 2147483648, %v666_v16  ;;  %v679_v43 = vand.u32 2147483647, %v666_v16  ;;  %vm675_vm5 = vweird.f32 %v666_v16 }
 0x2dc   :  { %v512_v26 = vsub.f32 1.0, %v511_v24  ;;  %893 = vrcp.f32 %v1164_v56  ;;  %vm535_vm15 = vcmp.eq.f32.partialorder %v534_v3, 8.507059e+37 }
 0x2dd   :  { %v682_v45 = vor.u32 1.1754944e-38, %v681_v41  ;;  %vm680_vm7 = vcmp.eq.f32.partialorder %v679_v43, 8.507059e+37 }
 0x2de   :  { %v513_v28 = vmul.f32 %v890_v23, %v512_v26 }
 0x2e0   :  { %v514_v30 = vadd.f32 %v890_v23, %v513_v28 }
 0x2e1   :  { %v892_v31 = vpop.eup %891 }
 0x2e2   :  { %v518_v35 = vsel %vm517_vm2, %v890_v23, %v514_v30  ;;  %v671_v5 = vmul.f32 %v892_v31, %v666_v16  ;;  %v701_v36 = vpop.permute.xlu2 %700  ;;  %vm676_vm4 = vweird.f32 %v892_v31  ;;  %v894_v49 = vpop.eup %893 }
 0x2e3   :  { %v523_v37 = vsel %vm520_vm3, %v522_v33, %v518_v35  ;;  %721 = vmatpush.msra.mxu3 %v701_v36  ;;  %vm677_vm6 = vmor %vm675_vm5, %vm676_vm4  ;;  %v526_v51 = vmul.f32 %v894_v49, %v1164_v56  ;;  %vm531_vm10 = vweird.f32 %v894_v49  ;;  %vm690_vm3 = vweird.f32 %v669_v50 }
 0x2e4   :  { %v672_v39 = vsub.f32 1.0, %v671_v5  ;;  %v524_v40 = vmul.f32 %v1147_v32, %v523_v37  ;;  %vm532_vm14 = vmor %vm530_vm13, %vm531_vm10  ;;  %vm695_vm5 = vcmp.eq.f32.partialorder %v694_v17, 8.507059e+37 }
 0x2e5   :  { %v527_v52 = vsub.f32 1.0, %v526_v51 }
 0x2e6   :  { %v673_v42 = vmul.f32 %v892_v31, %v672_v39  ;;  %826 = vmatmul.msk.f32.vlgmr.msrb.gmra.mxu3 %vm116_vm1, %v524_v40 }
 0x2e7   :  { %v528_v57 = vmul.f32 %v894_v49, %v527_v52 }
 0x2e8   :  { %v674_v44 = vadd.f32 %v892_v31, %v673_v42 }
 0x2e9   :  { %v529_v62 = vadd.f32 %v894_v49, %v528_v57 }
 0x2ea   :  { %v678_v46 = vsel %vm677_vm6, %v892_v31, %v674_v44  ;;  %vm781_vm6 = vcmask 195584  }
 0x2eb   :  { %v683_v47 = vsel %vm680_vm7, %v682_v45, %v678_v46  ;;  %v533_v6 = vsel %vm532_vm14, %v894_v49, %v529_v62  ;;  %vm778_vm7 = vcmask 130048  }
 0x2ec   :  { %v684_v48 = vmul.f32 %v1151_v34, %v683_v47  ;;  %v538_v11 = vsel %vm535_vm15, %v537_v9, %v533_v6 }
 0x2ed   :  { %v539_v18 = vmul.f32 %v1132_v14, %v538_v11 }
 0x2ee   :  { %832 = vmatmul.msk.f32.vlgmr.msra.gmra.mxu3 %vm116_vm1, %v684_v48  ;;  %v349_v32 = vpop.xlane.xlu1 %348 }
 0x2ef   :  { %895 = vrcp.f32 %v349_v32  ;;  %v376_v58 = vand.u32 2147483648, %v349_v32  ;;  %v374_v34 = vand.u32 2147483647, %v349_v32  ;;  %vm370_vm9 = vweird.f32 %v349_v32 }
 0x2f0   :  { %897 = vrcp.f32 %v669_v50 }
 0x2f1   :  { %v377_v61 = vor.u32 1.1754944e-38, %v376_v58  ;;  %vm375_vm12 = vcmp.eq.f32.partialorder %v374_v34, 8.507059e+37 }
 0x2f5   :  { %v896_v8 = vpop.eup %895 }
 0x2f6   :  { %v366_v53 = vmul.f32 %v896_v8, %v349_v32  ;;  %v898_v54 = vpop.eup %897  ;;  %vm371_vm8 = vweird.f32 %v896_v8 }
 0x2f7   :  { %v686_v10 = vmul.f32 %v898_v54, %v669_v50  ;;  %vm372_vm11 = vmor %vm370_vm9, %vm371_vm8  ;;  %vm691_vm2 = vweird.f32 %v898_v54 }
 0x2f8   :  { %v367_v55 = vsub.f32 1.0, %v366_v53  ;;  %vm692_vm4 = vmor %vm690_vm3, %vm691_vm2 }
 0x2f9   :  { %v687_v0 = vsub.f32 1.0, %v686_v10 }
 0x2fa   :  { %v368_v59 = vmul.f32 %v896_v8, %v367_v55 }
 0x2fb   :  { %v688_v7 = vmul.f32 %v898_v54, %v687_v0 }
 0x2fc   :  { %v369_v60 = vadd.f32 %v896_v8, %v368_v59 }
 0x2fd   :  { %v689_v12 = vadd.f32 %v898_v54, %v688_v7 }
 0x2fe   :  { %v373_v63 = vsel %vm372_vm11, %v896_v8, %v369_v60 }
 0x2ff   :  { %v378_v2 = vsel %vm375_vm12, %v377_v61, %v373_v63  ;;  %v693_v56 = vsel %vm692_vm4, %v898_v54, %v689_v12 }
 0x300   :  { %v379_v4 = vmul.f32 %v1156_v38, %v378_v2  ;;  %v697_v38 = vor.u32 1.1754944e-38, %v696_v15 }
 0x302   :  { %821 = vmatmul.msk.f32.vlgmr.msra.gmra.mxu1 %vm116_vm1, %v379_v4  ;;  %v698_v19 = vsel %vm695_vm5, %v697_v38, %v693_v56 }
 0x303   :  { %v699_v20 = vmul.f32 %v1141_v25, %v698_v19 }
 0x306   :  { %v727_v13 = vpop.permute.xlu1 %726 }
 0x307   :  { %747 = vmatpush.msra.mxu1 %v727_v13 }
 0x30a   :  { %827 = vmatmul.msk.f32.vlgmr.msrb.gmra.mxu1 %vm116_vm1, %v539_v18 }
 0x312   :  { %833 = vmatmul.msk.f32.vlgmr.msra.gmra.mxu1 %vm116_vm1, %v699_v20 }
 0x31d   :  { %v243_v21 = vpop.f32.mrf.mxu3 }
 0x342   :  { %v269_v22 = vpop.f32.mrf.mxu3 }
 0x34a   :  { %v403_v23 = vpop.f32.mrf.mxu3 }
 0x34b   :  { %754 = vrot.lane.b32.xlu2 %v403_v23, %s1007_s24 }
 0x369   :  { %v563_v24 = vpop.f32.mrf.mxu3 }
 0x36a   :  { %762 = vrot.lane.b32.xlu0 %v563_v24, %s1009_s1 }
 0x371   :  { %v723_v16 = vpop.f32.mrf.mxu3 }
 0x37f   :  { %v429_v14 = vpop.f32.mrf.mxu1 }
 0x380   :  { %756 = vrot.lane.b32.xlu1 %v429_v14, %s1007_s24 }
 0x387   :  { %v589_v26 = vpop.f32.mrf.mxu1 }
 0x388   :  { %764 = vrot.lane.b32.xlu2 %v589_v26, %s1009_s1  ;;  %770 = vrot.lane.b32.xlu1 %v723_v16, %s1023_s17 }
 0x38f   :  { %v749_v25 = vpop.f32.mrf.mxu1 }
 0x390   :  { %772 = vrot.lane.b32.xlu2 %v749_v25, %s1023_s17 }
 0x3a5   :  { %v755_v27 = vpop.permute.xlu2 %754 }
 0x3a6   :  { %v776_v36 = vsel %vm116_vm1, %v243_v21, %v755_v27 }
 0x3dc   :  { %v763_v5 = vpop.permute.xlu0 %762 }
 0x3dd   :  { %v779_v37 = vsel %vm778_vm7, %v776_v36, %v763_v5 }
 0x3e2   :  { %v765_v28 = vpop.permute.xlu2 %764 }
 0x3ea   :  { %v773_v31 = vpop.permute.xlu2 %772 }
 0x3f2   :  { %v757_v29 = vpop.permute.xlu1 %756 }
 0x3f3   :  { %v777_v30 = vsel %vm116_vm1, %v269_v22, %v757_v29 }
 0x3f4   :  { %v780_v33 = vsel %vm778_vm7, %v777_v30, %v765_v28 }
 0x3f5   :  { %v783_v35 = vsel %vm781_vm6, %v780_v33, %v773_v31 }
 0x3f6   :  { %899 = vtanh.f32 %v783_v35 }
 0x3fa   :  { %v771_v39 = vpop.permute.xlu1 %770 }
 0x3fb   :  { %v782_v40 = vsel %vm781_vm6, %v779_v37, %v771_v39 }
 0x3fc   :  { %v900_v41 = vpop.eup %899  ;;  %901 = vtanh.f32 %v782_v40 }
 0x3fd   :  { %787 = vst.msk [vmem:[#allocation8 + $0x8] sm:$0xff] %vm75_vm0, %v900_v41 }
 0x402   :  { %v902_v42 = vpop.eup %901 }
 0x403   :  { %786 = vst.msk [vmem:[#allocation8] sm:$0xff] %vm75_vm0, %v902_v42 }
 0x404   :  { %800 = dma.vmem_to_hbm [thread:$0]  %s793_s19, 256, %s795_s22, [#allocation4], %s1006_s23, %s1006_s23, %s1007_s24  }
 0x405   :  { %1003 = dma.done.wait [#allocation4], 256  }
 0x406   :  { %1004 = vsyncadd [#allocation4], 4294967040 }
 0x407   :  { %805 = vsyncpa [#allocation3], 1 }
 0x408   :  { %806 = vsyncpa [#allocation6], 1 }
 0x409   :  { %807 = vsyncpa [#allocation4], 1 }

</bundles_post_ra>
